<compile_context>
chip_gen: v7x
topology: tpu7x:2x2x1
jax: 0.10.0
libtpu: 0.0.40
codegen_flags: <defaults>
</compile_context>

<pallas_src>
import jax
import jax.numpy as jnp
from jax.experimental import pallas as pl
from jax.experimental.pallas import tpu as pltpu


def _round_up(n, m):
    return ((n + m - 1) // m) * m


def mlp_kernel(x_ref,
               w1_ref, b1_ref,
               w2_ref, b2_ref,
               w3_ref, b3_ref,
               w4_ref, b4_ref,
               o_ref):
    # One batch tile per grid step; whole layer chain fused in VMEM/MXU.
    mxu_dtype = w1_ref.dtype                      # bf16 (fast MXU path) or f32
    x = x_ref[...].astype(mxu_dtype)

    # Layer 1: 44 -> 128  (MXU, f32 accumulate)
    h = jnp.dot(x, w1_ref[...], preferred_element_type=jnp.float32) + b1_ref[...]
    h = jnp.maximum(h, 0.0).astype(mxu_dtype)

    # Layer 2: 128 -> 64
    h = jnp.dot(h, w2_ref[...], preferred_element_type=jnp.float32) + b2_ref[...]
    h = jnp.maximum(h, 0.0).astype(mxu_dtype)

    # Layer 3: 64 -> 16
    h = jnp.dot(h, w3_ref[...], preferred_element_type=jnp.float32) + b3_ref[...]
    h = jnp.maximum(h, 0.0)                       # stay f32 for the final layer

    # Layer 4: 16 -> 1. An N=1 matmul wastes a full MXU pass, so do it on the
    # VPU (elementwise mul) + XLU (lane reduce). w4 is passed as a (1, 16) row.
    out = jnp.sum(h * w4_ref[...], axis=-1, keepdims=True) + b4_ref[...]
    o_ref[...] = out.astype(o_ref.dtype)


def downstream_model(x, params, *, block_b=512, use_bf16=True):
    """Forward pass of DownstreamModel. x: [B, 44] f32 -> [B, 1] f32.

    params: list of (W [in, out], b [1, out]) for the 4 linear layers
    (equivalent to PyTorch's x @ W.T + b with W [out, in]).
    """
    (w1, b1), (w2, b2), (w3, b3), (w4, b4) = params
    B, D_in = x.shape
    assert D_in == 44

    mxu_dtype = jnp.bfloat16 if use_bf16 else jnp.float32
    w1m = w1.astype(mxu_dtype)
    w2m = w2.astype(mxu_dtype)
    w3m = w3.astype(mxu_dtype)
    w4_row = w4.reshape(1, -1).astype(jnp.float32)   # (1, 16), VPU final layer (f32)
    b1r = b1.astype(jnp.float32)
    b2r = b2.astype(jnp.float32)
    b3r = b3.astype(jnp.float32)
    b4r = b4.reshape(1, 1).astype(jnp.float32)

    # Batch tile: as large as requested (multiple of 8 sublanes), but capped at
    # ceil(B/2) rounded to 8 so the grid has >= 2 steps (v7x has 2 TensorCores).
    bb = _round_up(max(8, min(block_b, _round_up(pl.cdiv(B, 2), 8))), 8)
    grid_b = pl.cdiv(B, bb)
    B_pad = grid_b * bb
    if B_pad != B:
        # Ragged tail: zero-pad rows (padded rows computed then sliced off).
        x = jnp.pad(x, ((0, B_pad - B), (0, 0)))

    def full(arr):
        nd = arr.ndim
        # Constant block index -> Pallas keeps it VMEM-resident, no re-DMA per step.
        return pl.BlockSpec(arr.shape, lambda i, _nd=nd: (0,) * _nd)

    out = pl.pallas_call(
        mlp_kernel,
        out_shape=jax.ShapeDtypeStruct((B_pad, 1), jnp.float32),
        grid_spec=pltpu.PrefetchScalarGridSpec(
            num_scalar_prefetch=0,
            grid=(grid_b,),
            in_specs=[
                pl.BlockSpec((bb, 44), lambda i: (i, 0)),   # x batch tile
                full(w1m), full(b1r),
                full(w2m), full(b2r),
                full(w3m), full(b3r),
                full(w4_row), full(b4r),
            ],
            out_specs=pl.BlockSpec((bb, 1), lambda i: (i, 0)),
        ),
        compiler_params=pltpu.CompilerParams(
            dimension_semantics=("parallel",)),
    )(x, w1m, b1r, w2m, b2r, w3m, b3r, w4_row, b4r)

    return out[:B]


def init_params(key):
    """Deterministic init matching PyTorch nn.Linear shapes.
    Stored as (W [in, out], b [1, out])."""
    dims = [(44, 128), (128, 64), (64, 16), (16, 1)]
    params = []
    for (fan_in, fan_out) in dims:
        key, kw, kb = jax.random.split(key, 3)
        bound = 1.0 / jnp.sqrt(fan_in)
        w = jax.random.uniform(kw, (fan_in, fan_out), jnp.float32, -bound, bound)
        b = jax.random.uniform(kb, (1, fan_out), jnp.float32, -bound, bound)
        params.append((w, b))
    return params


def reference_forward(x, params, *, use_bf16=False):
    """Pure-JAX reference. use_bf16=True mirrors the kernel's precision scheme."""
    mxu_dtype = jnp.bfloat16 if use_bf16 else jnp.float32
    h = x
    for i, (w, b) in enumerate(params):
        if i < 3:
            h = jnp.dot(h.astype(mxu_dtype), w.astype(mxu_dtype),
                        preferred_element_type=jnp.float32) + b
            h = jnp.maximum(h, 0.0)
        else:
            h = h @ w + b            # final layer is f32 in the kernel too
    return h


if __name__ == "__main__":
    key = jax.random.PRNGKey(0)
    kx, kp = jax.random.split(key)

    B = 16
    x = jax.random.normal(kx, (B, 44), jnp.float32)
    params = init_params(kp)

    # Default (bf16-MXU) path.
    out = jax.block_until_ready(downstream_model(x, params))
    assert out.shape == (B, 1)

    ref_bf16 = reference_forward(x, params, use_bf16=True)
    ref_f32 = reference_forward(x, params, use_bf16=False)
    assert jnp.allclose(out, ref_bf16, atol=2e-3, rtol=2e-3), "mismatch vs bf16 reference"
    assert jnp.allclose(out, ref_f32, atol=5e-2, rtol=5e-2), "mismatch vs f32 reference"

    # Exact-precision f32 path.
    out_f32 = jax.block_until_ready(downstream_model(x, params, use_bf16=False))
    assert jnp.allclose(out_f32, ref_f32, atol=1e-5, rtol=1e-5), "f32 kernel mismatch"

    # Ragged batch (not a multiple of the tile) exercises the padding path.
    x_odd = jax.random.normal(kx, (13, 44), jnp.float32)
    out_odd = jax.block_until_ready(downstream_model(x_odd, params, use_bf16=False))
    assert jnp.allclose(out_odd, reference_forward(x_odd, params),
                        atol=1e-5, rtol=1e-5), "ragged-batch mismatch"

    print("KERNEL_OK")
</pallas_src>

<mosaic_0001>
module attributes {stable_mosaic.version = 11 : i64} {
  func.func @mlp_kernel(%arg0: i32, %arg1: memref<8x44xf32, #tpu.memory_space<vmem>>, %arg2: memref<44x128xbf16, #tpu.memory_space<vmem>>, %arg3: memref<1x128xf32, #tpu.memory_space<vmem>>, %arg4: memref<128x64xbf16, #tpu.memory_space<vmem>>, %arg5: memref<1x64xf32, #tpu.memory_space<vmem>>, %arg6: memref<64x16xbf16, #tpu.memory_space<vmem>>, %arg7: memref<1x16xf32, #tpu.memory_space<vmem>>, %arg8: memref<1x16xf32, #tpu.memory_space<vmem>>, %arg9: memref<1x1xf32, #tpu.memory_space<vmem>>, %arg10: memref<8x1xf32, #tpu.memory_space<vmem>>) attributes {dimension_semantics = [#tpu.dimension_semantics<parallel>], iteration_bounds = array<i64: 2>, scalar_prefetch = 0 : i64, scratch_operands = 0 : i64, tpu.core_type = #tpu.core_type<tc>, window_params = [{transform_indices = @transform_0, window_bounds = array<i64: 8, 44>}, {pipeline_mode = #tpu.pipeline_mode<synchronous>, transform_indices = @transform_1, window_bounds = array<i64: 44, 128>}, {pipeline_mode = #tpu.pipeline_mode<synchronous>, transform_indices = @transform_2, window_bounds = array<i64: 1, 128>}, {pipeline_mode = #tpu.pipeline_mode<synchronous>, transform_indices = @transform_3, window_bounds = array<i64: 128, 64>}, {pipeline_mode = #tpu.pipeline_mode<synchronous>, transform_indices = @transform_4, window_bounds = array<i64: 1, 64>}, {pipeline_mode = #tpu.pipeline_mode<synchronous>, transform_indices = @transform_5, window_bounds = array<i64: 64, 16>}, {pipeline_mode = #tpu.pipeline_mode<synchronous>, transform_indices = @transform_6, window_bounds = array<i64: 1, 16>}, {pipeline_mode = #tpu.pipeline_mode<synchronous>, transform_indices = @transform_7, window_bounds = array<i64: 1, 16>}, {pipeline_mode = #tpu.pipeline_mode<synchronous>, transform_indices = @transform_8, window_bounds = array<i64: 1, 1>}, {transform_indices = @transform_9, window_bounds = array<i64: 8, 1>}]} {
    %c0 = arith.constant 0 : index
    %c0_0 = arith.constant 0 : index
    %0 = vector.load %arg1[%c0, %c0_0] : memref<8x44xf32, #tpu.memory_space<vmem>>, vector<8x44xf32>
    %1 = arith.truncf %0 : vector<8x44xf32> to vector<8x44xbf16>
    %c0_1 = arith.constant 0 : index
    %c0_2 = arith.constant 0 : index
    %2 = vector.load %arg2[%c0_1, %c0_2] : memref<44x128xbf16, #tpu.memory_space<vmem>>, vector<44x128xbf16>
    %cst = arith.constant dense<0.000000e+00> : vector<8x128xf32>
    %3 = tpu.matmul %1, %2, %cst {dimension_numbers = #tpu.dot_dimension_numbers<[1], [0], [0], [1], [0, 0, 1, 1], [], []>} : vector<8x44xbf16>, vector<44x128xbf16>, vector<8x128xf32> -> vector<8x128xf32>
    %c0_3 = arith.constant 0 : index
    %c0_4 = arith.constant 0 : index
    %4 = vector.load %arg3[%c0_3, %c0_4] : memref<1x128xf32, #tpu.memory_space<vmem>>, vector<1x128xf32>
    %5 = vector.broadcast %4 : vector<1x128xf32> to vector<8x128xf32>
    %6 = arith.addf %3, %5 : vector<8x128xf32>
    %cst_5 = arith.constant 0.000000e+00 : f32
    %7 = vector.broadcast %cst_5 : f32 to vector<8x128xf32>
    %8 = arith.maximumf %6, %7 : vector<8x128xf32>
    %9 = arith.truncf %8 : vector<8x128xf32> to vector<8x128xbf16>
    %c0_6 = arith.constant 0 : index
    %c0_7 = arith.constant 0 : index
    %10 = vector.load %arg4[%c0_6, %c0_7] : memref<128x64xbf16, #tpu.memory_space<vmem>>, vector<128x64xbf16>
    %cst_8 = arith.constant dense<0.000000e+00> : vector<8x64xf32>
    %11 = tpu.matmul %9, %10, %cst_8 {dimension_numbers = #tpu.dot_dimension_numbers<[1], [0], [0], [1], [0, 0, 1, 1], [], []>} : vector<8x128xbf16>, vector<128x64xbf16>, vector<8x64xf32> -> vector<8x64xf32>
    %c0_9 = arith.constant 0 : index
    %c0_10 = arith.constant 0 : index
    %12 = vector.load %arg5[%c0_9, %c0_10] : memref<1x64xf32, #tpu.memory_space<vmem>>, vector<1x64xf32>
    %13 = vector.broadcast %12 : vector<1x64xf32> to vector<8x64xf32>
    %14 = arith.addf %11, %13 : vector<8x64xf32>
    %cst_11 = arith.constant 0.000000e+00 : f32
    %15 = vector.broadcast %cst_11 : f32 to vector<8x64xf32>
    %16 = arith.maximumf %14, %15 : vector<8x64xf32>
    %17 = arith.truncf %16 : vector<8x64xf32> to vector<8x64xbf16>
    %c0_12 = arith.constant 0 : index
    %c0_13 = arith.constant 0 : index
    %18 = vector.load %arg6[%c0_12, %c0_13] : memref<64x16xbf16, #tpu.memory_space<vmem>>, vector<64x16xbf16>
    %cst_14 = arith.constant dense<0.000000e+00> : vector<8x16xf32>
    %19 = tpu.matmul %17, %18, %cst_14 {dimension_numbers = #tpu.dot_dimension_numbers<[1], [0], [0], [1], [0, 0, 1, 1], [], []>} : vector<8x64xbf16>, vector<64x16xbf16>, vector<8x16xf32> -> vector<8x16xf32>
    %c0_15 = arith.constant 0 : index
    %c0_16 = arith.constant 0 : index
    %20 = vector.load %arg7[%c0_15, %c0_16] : memref<1x16xf32, #tpu.memory_space<vmem>>, vector<1x16xf32>
    %21 = vector.broadcast %20 : vector<1x16xf32> to vector<8x16xf32>
    %22 = arith.addf %19, %21 : vector<8x16xf32>
    %cst_17 = arith.constant 0.000000e+00 : f32
    %23 = vector.broadcast %cst_17 : f32 to vector<8x16xf32>
    %24 = arith.maximumf %22, %23 : vector<8x16xf32>
    %c0_18 = arith.constant 0 : index
    %c0_19 = arith.constant 0 : index
    %25 = vector.load %arg8[%c0_18, %c0_19] : memref<1x16xf32, #tpu.memory_space<vmem>>, vector<1x16xf32>
    %26 = vector.broadcast %25 : vector<1x16xf32> to vector<8x16xf32>
    %27 = arith.mulf %24, %26 : vector<8x16xf32>
    %cst_20 = arith.constant dense<0.000000e+00> : vector<8xf32>
    %28 = vector.multi_reduction <add>, %27, %cst_20 [1] : vector<8x16xf32> to vector<8xf32>
    %29 = vector.shape_cast %28 : vector<8xf32> to vector<8x1xf32>
    %c0_21 = arith.constant 0 : index
    %c0_22 = arith.constant 0 : index
    %30 = vector.load %arg9[%c0_21, %c0_22] : memref<1x1xf32, #tpu.memory_space<vmem>>, vector<1x1xf32>
    %31 = vector.broadcast %30 : vector<1x1xf32> to vector<8x1xf32>
    %32 = arith.addf %29, %31 : vector<8x1xf32>
    %c0_23 = arith.constant 0 : index
    %c0_24 = arith.constant 0 : index
    %33 = vector.load %arg10[%c0_23, %c0_24] : memref<8x1xf32, #tpu.memory_space<vmem>>, vector<8x1xf32>
    tpu.vector_store %arg10[%c0_23, %c0_24], %32 {strides = array<i32>} : memref<8x1xf32, #tpu.memory_space<vmem>>, vector<8x1xf32>,
    return
  }
  func.func @transform_0(%arg0: i32) -> (i32, i32) {
    %c0_i32 = arith.constant 0 : i32
    %c0_i32_0 = arith.constant 0 : i32
    return %arg0, %c0_i32 : i32, i32
  }
  func.func @transform_1(%arg0: i32) -> (i32, i32) {
    %c0_i32 = arith.constant 0 : i32
    %c0_i32_0 = arith.constant 0 : i32
    %c0_i32_1 = arith.constant 0 : i32
    return %c0_i32, %c0_i32_0 : i32, i32
  }
  func.func @transform_2(%arg0: i32) -> (i32, i32) {
    %c0_i32 = arith.constant 0 : i32
    %c0_i32_0 = arith.constant 0 : i32
    %c0_i32_1 = arith.constant 0 : i32
    return %c0_i32, %c0_i32_0 : i32, i32
  }
  func.func @transform_3(%arg0: i32) -> (i32, i32) {
    %c0_i32 = arith.constant 0 : i32
    %c0_i32_0 = arith.constant 0 : i32
    %c0_i32_1 = arith.constant 0 : i32
    return %c0_i32, %c0_i32_0 : i32, i32
  }
  func.func @transform_4(%arg0: i32) -> (i32, i32) {
    %c0_i32 = arith.constant 0 : i32
    %c0_i32_0 = arith.constant 0 : i32
    %c0_i32_1 = arith.constant 0 : i32
    return %c0_i32, %c0_i32_0 : i32, i32
  }
  func.func @transform_5(%arg0: i32) -> (i32, i32) {
    %c0_i32 = arith.constant 0 : i32
    %c0_i32_0 = arith.constant 0 : i32
    %c0_i32_1 = arith.constant 0 : i32
    return %c0_i32, %c0_i32_0 : i32, i32
  }
  func.func @transform_6(%arg0: i32) -> (i32, i32) {
    %c0_i32 = arith.constant 0 : i32
    %c0_i32_0 = arith.constant 0 : i32
    %c0_i32_1 = arith.constant 0 : i32
    return %c0_i32, %c0_i32_0 : i32, i32
  }
  func.func @transform_7(%arg0: i32) -> (i32, i32) {
    %c0_i32 = arith.constant 0 : i32
    %c0_i32_0 = arith.constant 0 : i32
    %c0_i32_1 = arith.constant 0 : i32
    return %c0_i32, %c0_i32_0 : i32, i32
  }
  func.func @transform_8(%arg0: i32) -> (i32, i32) {
    %c0_i32 = arith.constant 0 : i32
    %c0_i32_0 = arith.constant 0 : i32
    %c0_i32_1 = arith.constant 0 : i32
    return %c0_i32, %c0_i32_0 : i32, i32
  }
  func.func @transform_9(%arg0: i32) -> (i32, i32) {
    %c0_i32 = arith.constant 0 : i32
    %c0_i32_0 = arith.constant 0 : i32
    return %arg0, %c0_i32 : i32, i32
  }
}

</mosaic_0001>

<bundles_post_ra>
// kernel: tpu_custom_call.1
= control target key start
LH: loop header
LB: loop body
LE: loop exit
PB: predicated region body
PF: predicated region fallthrough
CT: control target
= control target key end

     0   :  { %s864_s11 = smov 0   ;;  %s966_s0 = inlined_call_operand.vmem [shape: f32[16,44], index: 0, kind: input, shape index: {}]   ;;  %s967_s1 = inlined_call_operand.vmem [shape: bf16[44,128], index: 1, kind: input, shape index: {}]   ;;  %s968_s2 = inlined_call_operand.vmem [shape: f32[1,128], index: 2, kind: input, shape index: {}]   ;;  %s969_s3 = inlined_call_operand.vmem [shape: bf16[128,64], index: 3, kind: input, shape index: {}]   ;;  %s970_s4 = inlined_call_operand.vmem [shape: f32[1,64], index: 4, kind: input, shape index: {}]   ;;  %s971_s5 = inlined_call_operand.vmem [shape: bf16[64,16], index: 5, kind: input, shape index: {}]   ;;  %s972_s6 = inlined_call_operand.vmem [shape: f32[1,16], index: 6, kind: input, shape index: {}]   ;;  %s973_s7 = inlined_call_operand.vmem [shape: f32[1,16], index: 7, kind: input, shape index: {}]   ;;  %s974_s8 = inlined_call_operand.<no memory space> [shape: f32[1,1], index: 8, kind: input, shape index: {}]   ;;  %s975_s9 = inlined_call_operand.vmem [shape: f32[16,1], index: 9, kind: output, shape index: {}]  }
   0x1   :  { %v14_v0 = vstv %s974_s8 }
   0x2   :  { %15 = vst [vmem:[#allocation2] sm:$0x1] %v14_v0 }
   0x3 LB: > { %s685_s12 = sadd.s32 4294967295, %s807_s11   ;;  %p689_p0 = scmp.ge.s32.totalorder %s807_s11, 1  ;;  %s807_s11 = sphi %s864_s11, %s21_s11  }
   0x4   : > { %p288_p1 = scmp.lt.s32.totalorder %s807_s11, 3 }
   0x6   : > { %p289_p2 = pnand %p689_p0, %p288_p1 }
   0x7   : > { %v786_v1 = vld [vmem:[%s967_s1] sm:$0xff] (!%p289_p2)   ;;  %v809_v2 = vmov (!%p289_p2), 0.0   ;;  %v787_v3 = vld [vmem:[%s967_s1 + $0x8] sm:$0xff] (!%p289_p2)   ;;  %v788_v4 = vld [vmem:[%s967_s1 + $0x10] sm:$0x3f] (!%p289_p2)   ;;  %p322_p3 = scmp.lt.s32.totalorder (!%p289_p2), %s685_s12, 1 }
   0x8   : > { %292 = sbr.rel (%p289_p2) target bundleno = 821 (0x335), region = 56  ;;  %734 = vmatprep.subr.bf16.mxu0 (!%p289_p2), %v809_v2  ;;  %744 = vmatprep.subr.bf16.mxu1 (!%p289_p2), %v809_v2  ;;  %v789_v5 = vld [vmem:[%s969_s3] sm:$0xff] (!%p289_p2)   ;;  %vm367_vm0 = vcmask (!%p289_p2), 1045504   ;;  %vm810_vm1 = vmmov (!%p289_p2), 0   ;;  %v790_v6 = vld [vmem:[%s969_s3 + $0x8] sm:$0xff] (!%p289_p2)   ;;  %vm363_vm2 = vcmask (!%p289_p2), 359424  }
   0x9   : > { %735 = vmatpush3.bf16.msra.mxu0 (!%p289_p2), %v786_v1  ;;  %740 = vmatprep.mubr.msk.bf16.mxu0 (!%p289_p2), %vm810_vm1, %v809_v2  ;;  %v369_v7 = vsel (!%p289_p2), %vm367_vm0, %v788_v4, 0  ;;  %v791_v9 = vld [vmem:[%s969_s3 + $0x10] sm:$0xff] (!%p289_p2)   ;;  %v792_v11 = vld [vmem:[%s969_s3 + $0x18] sm:$0xff] (!%p289_p2)   ;;  %v793_v12 = vld [vmem:[%s969_s3 + $0x20] sm:$0xff] (!%p289_p2)   ;;  %vm565_vm3 = vcmask (!%p289_p2), 523264   ;;  %vm618_vm4 = vcmask (!%p289_p2), 130048  }
   0xa   : > { %736 = vmatprep.subr.bf16.mxu0 (!%p289_p2), %v809_v2  ;;  %760 = vmatprep.mubr.msk.bf16.mxu1 (!%p289_p2), %vm810_vm1, %v809_v2  ;;  %v794_v13 = vld [vmem:[%s969_s3 + $0x28] sm:$0xff] (!%p289_p2)   ;;  %v795_v14 = vld [vmem:[%s969_s3 + $0x30] sm:$0xff] (!%p289_p2)   ;;  %v796_v15 = vld [vmem:[%s969_s3 + $0x38] sm:$0xff] (!%p289_p2)   ;;  %vm630_vm5 = vcmask (!%p289_p2), 7168  }
   0xb   : > { %745 = vmatpush3.bf16.msra.mxu1 (!%p289_p2), %v789_v5  ;;  %v797_v16 = vld [vmem:[%s971_s5] sm:$0xff] (!%p289_p2)   ;;  %v798_v17 = vld [vmem:[%s971_s5 + $0x8] sm:$0xff] (!%p289_p2)   ;;  %v799_v26 = vld [vmem:[%s971_s5 + $0x10] sm:$0xff] (!%p289_p2)  }
   0xc   : > { %746 = vmatprep.subr.bf16.mxu1 (!%p289_p2), %v809_v2  ;;  %v692_v18 = vld [vmem:[%s968_s2] ss:$0 sm:$0xff] (!%p289_p2)  ;;  %v800_v27 = vld [vmem:[%s971_s5 + $0x18] sm:$0xff] (!%p289_p2)  }
   0xd   : > { %737 = vmatpush3.bf16.msra.mxu0 (!%p289_p2), %v787_v3  ;;  %v697_v28 = vld [vmem:[%s970_s4] ss:$0 sm:$0xff] (!%p289_p2) }
   0xe   : > { %738 = vmatprep.subr.bf16.mxu0 (!%p289_p2), %v809_v2  ;;  %v706_v36 = vld [vmem:[%s972_s6] ss:$0 sm:$0xff] (!%p289_p2) }
   0xf   : > { %s977_s12 = smov (!%p322_p3, %s685_s12), 1  ;;  %747 = vmatpush3.bf16.msra.mxu1 %v790_v6  ;;  %v712_v41 = vld [vmem:[%s973_s7] ss:$0 sm:$0xff] }
  0x10   : > { %s690_s22 = sshll.u32 %s977_s12, 3  ;;  %748 = vmatprep.subr.bf16.mxu1 %v809_v2  ;;  %v713_v46 = vld [vmem:[#allocation2] ss:$0 sm:$0xff] }
  0x11   : > { %s325_s25 = scalar_lea.vmem %s966_s0, %s690_s22  ;;  %739 = vmatpush3.bf16.msra.mxu0 %v369_v7  ;;  %s329_s17 = scalar_lea.vmem %s975_s9, %s690_s22 }
  0x12   : > { %v331_v8 = vld [vmem:[%s325_s25] sm:$0xff]  ;;  %764 = vmatprep.subr.bf16.mxu0 %v809_v2 }
  0x13   : > { %v332_v10 = vpack.c.bf16 %v331_v8, %v331_v8  ;;  %749 = vmatpush3.bf16.msra.mxu1 %v791_v9 }
  0x14   : > { %750 = vmatprep.subr.bf16.mxu1 %v809_v2 }
  0x15   : > { %741 = vmatmul.mubr.msk.bf16.vlgmr.msra.gmra.mrb[0].mxu0 %vm363_vm2, %v332_v10 }
  0x16   : > { %772 = vmatprep.mubr.msk.bf16.mxu0 %vm810_vm1, %v809_v2  ;;  %765 = vmatpush3.bf16.msra.mxu0 %v797_v16 }
  0x17   : > { %751 = vmatpush3.bf16.msra.mxu1 %v792_v11  ;;  %766 = vmatprep.subr.bf16.mxu0 %v809_v2 }
  0x18   : > { %752 = vmatprep.subr.bf16.mxu1 %v809_v2 }
  0x1a   : > { %767 = vmatpush3.bf16.msra.mxu0 %v798_v17 }
  0x1b   : > { %753 = vmatpush3.bf16.msra.mxu1 %v793_v12  ;;  %768 = vmatprep.subr.bf16.mxu0 %v809_v2 }
  0x1c   : > { %754 = vmatprep.subr.bf16.mxu1 %v809_v2 }
  0x1e   : > { %769 = vmatpush3.bf16.msra.mxu0 %v799_v26 }
  0x1f   : > { %755 = vmatpush3.bf16.msra.mxu1 %v794_v13  ;;  %770 = vmatprep.subr.bf16.mxu0 %v809_v2 }
  0x20   : > { %756 = vmatprep.subr.bf16.mxu1 %v809_v2 }
  0x22   : > { %771 = vmatpush3.bf16.msra.mxu0 %v800_v27 }
  0x23   : > { %757 = vmatpush3.bf16.msra.mxu1 %v795_v14 }
  0x24   : > { %758 = vmatprep.subr.bf16.mxu1 %v809_v2 }
  0x27   : > { %759 = vmatpush3.bf16.msra.mxu1 %v796_v15 }
  0xe8   : > { %v405_v19 = vpop.f32.mrb[0].mxu0 }
  0xe9   : > { %v406_v20 = vadd.f32 %v692_v18, %v405_v19  ;;  %v742_v21 = vpop.f32.mrb[1].mxu0 }
  0xea   : > { %v408_v22 = vpop.f32.mrb[2].mxu0 }
  0xeb   : > { %v411_v23 = vmax.f32 %v406_v20, 0.0  ;;  %v743_v24 = vpop.f32.mrb[3].mxu0 }
  0xed   : > { %v412_v25 = vpack.c.bf16 %v411_v23, %v411_v23 }
  0xef   : > { %761 = vmatmul.mubr.bf16.vlgmr.msra.gmra.mrb[0].mxu1 %v412_v25 }
 0x1c2   : > { %v518_v29 = vpop.f32.mrb[0].mxu1 }
 0x1c3   : > { %v519_v30 = vadd.f32 %v697_v28, %v518_v29  ;;  %v762_v31 = vpop.f32.mrb[1].mxu1 }
 0x1c4   : > { %v521_v32 = vpop.f32.mrb[2].mxu1 }
 0x1c5   : > { %v524_v33 = vmax.f32 %v519_v30, 0.0  ;;  %v763_v34 = vpop.f32.mrb[3].mxu1 }
 0x1c7   : > { %v525_v35 = vpack.c.bf16 %v524_v33, %v524_v33 }
 0x1c9   : > { %773 = vmatmul.mubr.msk.bf16.vlgmr.msra.gmra.mrb[4].mxu0 %vm565_vm3, %v525_v35 }
 0x29c   : > { %v603_v37 = vpop.f32.mrb[4].mxu0 }
 0x29d   : > { %v604_v38 = vadd.f32 %v706_v36, %v603_v37  ;;  %v774_v39 = vpop.f32.mrb[5].mxu0 }
 0x29e   : > { %v606_v40 = vpop.f32.mrb[6].mxu0 }
 0x29f   : > { %v609_v42 = vmax.f32 %v604_v38, 0.0  ;;  %v775_v43 = vpop.f32.mrb[7].mxu0 }
 0x2a1   : > { %v617_v44 = vmul.f32 %v712_v41, %v609_v42 }
 0x2a3   : > { %v619_v45 = vsel %vm618_vm4, %v617_v44, 0.0 }
 0x2a4   : > { %620 = vadd.xlane.f32.xlu0 %v619_v45 }
 0x331   : > { %v621_v47 = vpop.xlane.xlu0 %620 }
 0x332   : > { %v629_v48 = vadd.f32 %v713_v46, %v621_v47 }
 0x334   : > { %631 = vst.msk [vmem:[%s329_s17] sm:$0xff] %vm630_vm5, %v629_v48 }
 0x335 PF: > { %s21_s11 = sadd.s32 1, %s807_s11  }
 0x336   : > { %p18_p4 = scmp.ge.s32.totalorder %s21_s11, 4  }
 0x338   :  { %20 = sbr.rel (!%p18_p4) target bundleno = 3 (0x3), region = 86 }

</bundles_post_ra>
